<compile_context>
chip_gen: v6e
topology: v6e:2x2x1
jax: 0.10.0
libtpu: 0.0.40
codegen_flags: <defaults>
</compile_context>

<pallas_src>
import math

import jax
import jax.numpy as jnp
from jax.experimental import pallas as pl
from jax.experimental.pallas import tpu as pltpu

HIDDEN = 100
HIDDEN_PAD = 128  # lane-aligned hidden width


def _mlp_value_kernel(x_ref, w1_ref, b1_ref, w2_ref, b2_ref, o_ref):
    # x: (TB, S); w1: (S, 128); b1: (1, 128); w2: (1, 128); b2: (1, 1); o: (1, TB)
    x = x_ref[...]
    h = jnp.dot(x, w1_ref[...], preferred_element_type=jnp.float32) + b1_ref[...]
    h = jnp.maximum(h, 0.0)                      # ReLU; zero-padded cols stay 0
    # fc2 projection (out_features=1) as VPU multiply + lane reduce: avoids a
    # second MXU push whose output would use 1 of 128/256 MXU columns.
    col = jnp.sum(h * w2_ref[...], axis=-1, keepdims=True) + b2_ref[...]   # (TB, 1)
    # Relay the column into a lane-major row so the store is lane-dense
    # (unmasked vst) instead of TB/8 masked single-lane stores.  XLU has slack.
    o_ref[...] = jnp.transpose(col, (1, 0)).astype(o_ref.dtype)            # (1, TB)
    # NOTE: self.tanh is defined in the PyTorch module but never applied in
    # forward(), so it is intentionally omitted here.


def prepare_params(w1, b1, w2, b2, hidden_pad=HIDDEN_PAD):
    """One-time preprocessing (hoisted out of the per-call path):
    transpose to (in, out), zero-pad hidden 100 -> 128, make biases 2-D.
    Padded hidden columns are zero, so relu(0+0)*0 contributes nothing."""
    hidden, state_dim = w1.shape
    w1_t = jnp.zeros((state_dim, hidden_pad), jnp.float32).at[:, :hidden].set(w1.T)
    b1_p = jnp.zeros((1, hidden_pad), jnp.float32).at[0, :hidden].set(b1)
    w2_r = jnp.zeros((1, hidden_pad), jnp.float32).at[0, :hidden].set(w2[0])
    b2_2d = b2.reshape(1, 1).astype(jnp.float32)
    return w1_t, b1_p, w2_r, b2_2d


def _round_up(n, m):
    return ((n + m - 1) // m) * m


def mlp_value_forward(x, prepared, *, tb=8192):
    """x: (B, state_dim) f32; prepared = prepare_params(...). Returns (B, 1) f32."""
    w1_t, b1_p, w2_r, b2_2d = prepared
    B, S = x.shape
    h_pad = w1_t.shape[1]

    # Batch tile: multiple of 8 sublanes, never larger than the 8-padded batch.
    tb = max(8, min(_round_up(int(tb), 8), _round_up(B, 8)))
    # v7x: if a single tile would cover the batch, split into 2 balanced tiles
    # so the "parallel" axis can be sharded across its 2 TensorCores.
    if pl.cdiv(B, tb) < 2 and B > 8:
        tb = max(8, _round_up(pl.cdiv(B, 2), 8))
    num_tiles = pl.cdiv(B, tb)

    # Scoped-VMEM budget from lane-padded tile sizes, plus headroom.
    s_pad = _round_up(S, 128)
    vmem_limit = int(
        2 * tb * s_pad * 4                                     # x double buffer (lane padded)
        + 2 * 8 * tb * 4                                       # (1, tb) out double buffer
        + 2 * tb * h_pad * 4                                   # intermediate h / relu copies
        + 2 * (_round_up(S, 8) * h_pad + 2 * 8 * h_pad + 8 * 128) * 4  # resident params
    ) + (4 << 20)
    vmem_limit = max(vmem_limit, 8 << 20)

    out = pl.pallas_call(
        _mlp_value_kernel,
        out_shape=jax.ShapeDtypeStruct((num_tiles, tb), jnp.float32),
        grid=(num_tiles,),
        in_specs=[
            pl.BlockSpec((tb, S), lambda i: (i, 0)),       # x: pipelined over rows
            pl.BlockSpec((S, h_pad), lambda i: (0, 0)),    # weights stay VMEM-resident
            pl.BlockSpec((1, h_pad), lambda i: (0, 0)),
            pl.BlockSpec((1, h_pad), lambda i: (0, 0)),
            pl.BlockSpec((1, 1), lambda i: (0, 0)),
        ],
        out_specs=pl.BlockSpec((1, tb), lambda i: (i, 0)),  # lane-dense output row
        compiler_params=pltpu.CompilerParams(
            dimension_semantics=("parallel",),  # shard batch tiles across v7x's 2 TCs
            vmem_limit_bytes=vmem_limit,
        ),
    )(x, w1_t, b1_p, w2_r, b2_2d)
    # Lane-dense (num_tiles, tb) slab -> (B, 1) column (tail rows were garbage
    # from the ragged last x block and are sliced off here).
    return out.reshape(num_tiles * tb)[:B].reshape(B, 1)


def init_params(key, state_dim, hidden=HIDDEN):
    """Deterministic init matching MLPValue.__init__ semantics:
    fc1.weight: kaiming_normal_ (std = sqrt(2/fan_in));
    fc2.weight: xavier_normal_ (std = sqrt(2/(fan_in+fan_out)));
    biases: PyTorch Linear default U(-1/sqrt(fan_in), 1/sqrt(fan_in))."""
    k1, k2, k3, k4 = jax.random.split(key, 4)

    std1 = math.sqrt(2.0 / state_dim)
    w1 = std1 * jax.random.normal(k1, (hidden, state_dim), dtype=jnp.float32)
    bound1 = 1.0 / math.sqrt(state_dim)
    b1 = jax.random.uniform(k2, (hidden,), minval=-bound1, maxval=bound1,
                            dtype=jnp.float32)

    std2 = math.sqrt(2.0 / (hidden + 1))
    w2 = std2 * jax.random.normal(k3, (1, hidden), dtype=jnp.float32)
    bound2 = 1.0 / math.sqrt(hidden)
    b2 = jax.random.uniform(k4, (1,), minval=-bound2, maxval=bound2,
                            dtype=jnp.float32)
    return w1, b1, w2, b2


if __name__ == "__main__":
    key = jax.random.PRNGKey(0)
    kx, kp = jax.random.split(key)

    batch, state_dim = 8, 32
    x = jax.random.normal(kx, (batch, state_dim), dtype=jnp.float32)
    w1, b1, w2, b2 = init_params(kp, state_dim)
    prepared = prepare_params(w1, b1, w2, b2)   # one-time: transpose/pad/reshape

    # Small shape (single grid step, exact tile).
    out = jax.block_until_ready(mlp_value_forward(x, prepared))
    ref = jnp.maximum(x @ w1.T + b1, 0.0) @ w2.T + b2
    assert out.shape == (batch, 1)
    assert jnp.allclose(out, ref, atol=1e-5, rtol=1e-5)

    # Default tb with a mid-size batch: exercises the v7x 2-tile split and the
    # lane-dense output slab.
    batch2 = 300
    x2 = jax.random.normal(jax.random.PRNGKey(1), (batch2, state_dim),
                           dtype=jnp.float32)
    out2 = jax.block_until_ready(mlp_value_forward(x2, prepared))
    ref2 = jnp.maximum(x2 @ w1.T + b1, 0.0) @ w2.T + b2
    assert out2.shape == (batch2, 1)
    assert jnp.allclose(out2, ref2, atol=1e-5, rtol=1e-5)

    # Explicit small tile: exercises multi-tile grid + ragged (non-dividing)
    # last block with no wrapper-side padding.
    out3 = jax.block_until_ready(mlp_value_forward(x2, prepared, tb=128))
    assert out3.shape == (batch2, 1)
    assert jnp.allclose(out3, ref2, atol=1e-5, rtol=1e-5)

    print("KERNEL_OK")
</pallas_src>

<mosaic_0001>
module attributes {stable_mosaic.version = 11 : i64} {
  func.func @_mlp_value_kernel(%arg0: i32, %arg1: memref<8x32xf32, #tpu.memory_space<vmem>>, %arg2: memref<32x128xf32, #tpu.memory_space<vmem>>, %arg3: memref<1x128xf32, #tpu.memory_space<vmem>>, %arg4: memref<1x128xf32, #tpu.memory_space<vmem>>, %arg5: memref<1x1xf32, #tpu.memory_space<vmem>>, %arg6: memref<1x8xf32, #tpu.memory_space<vmem>>) attributes {dimension_semantics = [#tpu.dimension_semantics<parallel>], iteration_bounds = array<i64: 1>, scalar_prefetch = 0 : i64, scratch_operands = 0 : i64, tpu.core_type = #tpu.core_type<tc>, window_params = [{transform_indices = @transform_0, window_bounds = array<i64: 8, 32>}, {pipeline_mode = #tpu.pipeline_mode<synchronous>, transform_indices = @transform_1, window_bounds = array<i64: 32, 128>}, {pipeline_mode = #tpu.pipeline_mode<synchronous>, transform_indices = @transform_2, window_bounds = array<i64: 1, 128>}, {pipeline_mode = #tpu.pipeline_mode<synchronous>, transform_indices = @transform_3, window_bounds = array<i64: 1, 128>}, {pipeline_mode = #tpu.pipeline_mode<synchronous>, transform_indices = @transform_4, window_bounds = array<i64: 1, 1>}, {transform_indices = @transform_5, window_bounds = array<i64: 1, 8>}]} {
    %c0 = arith.constant 0 : index
    %c0_0 = arith.constant 0 : index
    %0 = vector.load %arg1[%c0, %c0_0] : memref<8x32xf32, #tpu.memory_space<vmem>>, vector<8x32xf32>
    %c0_1 = arith.constant 0 : index
    %c0_2 = arith.constant 0 : index
    %1 = vector.load %arg2[%c0_1, %c0_2] : memref<32x128xf32, #tpu.memory_space<vmem>>, vector<32x128xf32>
    %cst = arith.constant dense<0.000000e+00> : vector<8x128xf32>
    %2 = tpu.matmul %0, %1, %cst {dimension_numbers = #tpu.dot_dimension_numbers<[1], [0], [0], [1], [0, 0, 1, 1], [], []>} : vector<8x32xf32>, vector<32x128xf32>, vector<8x128xf32> -> vector<8x128xf32>
    %c0_3 = arith.constant 0 : index
    %c0_4 = arith.constant 0 : index
    %3 = vector.load %arg3[%c0_3, %c0_4] : memref<1x128xf32, #tpu.memory_space<vmem>>, vector<1x128xf32>
    %4 = vector.broadcast %3 : vector<1x128xf32> to vector<8x128xf32>
    %5 = arith.addf %2, %4 : vector<8x128xf32>
    %cst_5 = arith.constant 0.000000e+00 : f32
    %6 = vector.broadcast %cst_5 : f32 to vector<8x128xf32>
    %7 = arith.maximumf %5, %6 : vector<8x128xf32>
    %c0_6 = arith.constant 0 : index
    %c0_7 = arith.constant 0 : index
    %8 = vector.load %arg4[%c0_6, %c0_7] : memref<1x128xf32, #tpu.memory_space<vmem>>, vector<1x128xf32>
    %9 = vector.broadcast %8 : vector<1x128xf32> to vector<8x128xf32>
    %10 = arith.mulf %7, %9 : vector<8x128xf32>
    %cst_8 = arith.constant dense<0.000000e+00> : vector<8xf32>
    %11 = vector.multi_reduction <add>, %10, %cst_8 [1] : vector<8x128xf32> to vector<8xf32>
    %12 = vector.shape_cast %11 : vector<8xf32> to vector<8x1xf32>
    %c0_9 = arith.constant 0 : index
    %c0_10 = arith.constant 0 : index
    %13 = vector.load %arg5[%c0_9, %c0_10] : memref<1x1xf32, #tpu.memory_space<vmem>>, vector<1x1xf32>
    %14 = vector.broadcast %13 : vector<1x1xf32> to vector<8x1xf32>
    %15 = arith.addf %12, %14 : vector<8x1xf32>
    %16 = tpu.transpose %15, [1, 0] : vector<8x1xf32> -> vector<1x8xf32>
    %c0_11 = arith.constant 0 : index
    %c0_12 = arith.constant 0 : index
    %17 = vector.load %arg6[%c0_11, %c0_12] : memref<1x8xf32, #tpu.memory_space<vmem>>, vector<1x8xf32>
    tpu.vector_store %arg6[%c0_11, %c0_12], %16 {strides = array<i32>} : memref<1x8xf32, #tpu.memory_space<vmem>>, vector<1x8xf32>,
    return
  }
  func.func @transform_0(%arg0: i32) -> (i32, i32) {
    %c0_i32 = arith.constant 0 : i32
    %c0_i32_0 = arith.constant 0 : i32
    return %arg0, %c0_i32 : i32, i32
  }
  func.func @transform_1(%arg0: i32) -> (i32, i32) {
    %c0_i32 = arith.constant 0 : i32
    %c0_i32_0 = arith.constant 0 : i32
    %c0_i32_1 = arith.constant 0 : i32
    return %c0_i32, %c0_i32_0 : i32, i32
  }
  func.func @transform_2(%arg0: i32) -> (i32, i32) {
    %c0_i32 = arith.constant 0 : i32
    %c0_i32_0 = arith.constant 0 : i32
    %c0_i32_1 = arith.constant 0 : i32
    return %c0_i32, %c0_i32_0 : i32, i32
  }
  func.func @transform_3(%arg0: i32) -> (i32, i32) {
    %c0_i32 = arith.constant 0 : i32
    %c0_i32_0 = arith.constant 0 : i32
    %c0_i32_1 = arith.constant 0 : i32
    return %c0_i32, %c0_i32_0 : i32, i32
  }
  func.func @transform_4(%arg0: i32) -> (i32, i32) {
    %c0_i32 = arith.constant 0 : i32
    %c0_i32_0 = arith.constant 0 : i32
    %c0_i32_1 = arith.constant 0 : i32
    return %c0_i32, %c0_i32_0 : i32, i32
  }
  func.func @transform_5(%arg0: i32) -> (i32, i32) {
    %c0_i32 = arith.constant 0 : i32
    %c0_i32_0 = arith.constant 0 : i32
    return %arg0, %c0_i32 : i32, i32
  }
}

</mosaic_0001>

<bundles_post_ra>
// kernel: tpu_custom_call.1
= control target key start
LH: loop header
LB: loop body
LE: loop exit
PB: predicated region body
PF: predicated region fallthrough
CT: control target
= control target key end

     0   :  { %s352_s0 = inlined_call_operand.hbm [shape: f32[8,32], index: 0, kind: input, shape index: {}]   ;;  %s353_s1 = inlined_call_operand.hbm [shape: f32[32,128], index: 1, kind: input, shape index: {}]   ;;  %s354_s2 = inlined_call_operand.vmem [shape: f32[1,128], index: 2, kind: input, shape index: {}]   ;;  %s355_s3 = inlined_call_operand.vmem [shape: f32[1,128], index: 3, kind: input, shape index: {}]   ;;  %s356_s4 = inlined_call_operand.<no memory space> [shape: f32[1,1], index: 4, kind: input, shape index: {}]   ;;  %s357_s5 = inlined_call_operand.hbm [shape: f32[1,8], index: 5, kind: output, shape index: {}]  }
   0x1   :  { %v10_v0 = vstv %s356_s4 }
   0x2   :  { %11 = vst [vmem:[#allocation2] sm:$0x1] %v10_v0 }
   0x3   :  { %12 = vsyncpa [#allocation4], 0 }
   0x4   :  { %13 = vsyncpa [#allocation7], 0 }
   0x5   :  { %14 = vsyncpa [#allocation5], 0  ;;  %s297_s20 = smov [#allocation3]   ;;  %s298_s22 = smov [#allocation6]  }
   0x6   :  { %s21_s21 = sshll.u32 %s297_s20, 4  ;;  %s30_s23 = sshll.u32 %s298_s22, 4  ;;  %s22_s21 = int_to_ptr.vmem [resolvable:$true] %s21_s21  ;;  %s31_s23 = int_to_ptr.vmem [resolvable:$true] %s30_s23 }
   0x7   :  { %s239_s24 = scalar_lea.vmem %s22_s21, 128  ;;  %p244_p1 = scmp.lt.s32.totalorder %s22_s21, %s22_s21 }
   0x8   :  { %p240_p0 = scmp.ne.s32.totalorder %s22_s21, %s239_s24  ;;  %p245_p2 = scmp.lt.s32.totalorder %s239_s24, %s239_s24 }
   0xa   :  { %p246_p3 = por %p245_p2, %p244_p1 }
   0xc   :  { %p247_p4 = pnand %p246_p3, %p240_p0 }
   0xe   :  { %250 = shalt.err (!%p247_p4)
}
   0xf   :  { %24 = dma.hbm_to_vmem [thread:$0]  %s352_s0, 128, %s22_s21, [#allocation4]  }
  0x10   :  { %s259_s4 = scalar_lea.vmem %s31_s23, 512  ;;  %p264_p6 = scmp.lt.s32.totalorder %s31_s23, %s31_s23 }
  0x11   :  { %p260_p5 = scmp.ne.s32.totalorder %s31_s23, %s259_s4  ;;  %p265_p7 = scmp.lt.s32.totalorder %s259_s4, %s259_s4 }
  0x13   :  { %p266_p8 = por %p265_p7, %p264_p6 }
  0x15   :  { %p267_p9 = pnand %p266_p8, %p260_p5 }
  0x17   :  { %270 = shalt.err (!%p267_p9)
}
  0x18   :  { %s299_s27 = smov 128   ;;  %s300_s28 = smov 8  }
  0x19   :  { %36 = dma.hbm_to_vmem [thread:$0]  %s353_s1, 512, %s31_s23, [#allocation7], %s299_s27, %s299_s27, %s300_s28  }
  0x1a   :  { %291 = dma.done.wait [#allocation4], 128  }
  0x1b   :  { %292 = vsyncadd [#allocation4], 4294967168 }
  0x1c   :  { %293 = dma.done.wait [#allocation7], 512  }
  0x1d   :  { %294 = vsyncadd [#allocation7], 4294966784  ;;  %v301_v1 = vmov 0.0   ;;  %vm302_vm0 = vmmov 0   ;;  %v53_v2 = vld [vmem:[#allocation6 + $0x18] sm:$0xff]  ;;  %v52_v3 = vld [vmem:[#allocation6 + $0x10] sm:$0xff] }
  0x1e   :  { %213 = vmatprep.subr.mxu0 %v301_v1  ;;  %221 = vmatprep.mubr.msk.f32.mxu0 %vm302_vm0, %v301_v1  ;;  %v51_v4 = vld [vmem:[#allocation6 + $0x8] sm:$0xff]  ;;  %v50_v5 = vld [vmem:[#allocation6] sm:$0xff]  ;;  %v49_v6 = vld [vmem:[#allocation3] sm:$0xff]  ;;  %vm61_vm1 = vcmask 261120   ;;  %s303_s8 = smov [#allocation8]   ;;  %vm186_vm2 = vcmask 57344  }
  0x1f   :  { %214 = vmatpush3.msra.mxu0 %v53_v2  ;;  %v204_v7 = vld [vmem:[%s354_s2] ss:$0 sm:$0xff]  ;;  %s194_s9 = sshll.u32 %s303_s8, 4  ;;  %s195_s9 = int_to_ptr.vmem [resolvable:$true] %s194_s9 }
  0x20   :  { %215 = vmatprep.subr.mxu0 %v301_v1  ;;  %v206_v11 = vld [vmem:[%s355_s3] ss:$0 sm:$0xff]  ;;  %s271_s2 = scalar_lea.vmem %s195_s9, 16  ;;  %s275_s10 = scalar_lea.vmem %s195_s9, 32 }
  0x21   :  { %216 = vmatpush3.msra.mxu0 %v52_v3  ;;  %v207_v14 = vld [vmem:[#allocation2] ss:$0 sm:$0xff]  ;;  %p272_p10 = scmp.ne.s32.totalorder %s195_s9, %s271_s2  ;;  %p276_p11 = scmp.lt.s32.totalorder %s195_s9, %s195_s9 }
  0x22   :  { %217 = vmatprep.subr.mxu0 %v301_v1  ;;  %p277_p12 = scmp.lt.s32.totalorder %s275_s10, %s271_s2 }
  0x23   :  { %218 = vmatpush3.msra.mxu0 %v51_v4 }
  0x24   :  { %219 = vmatprep.subr.mxu0 %v301_v1  ;;  %p278_p13 = por %p277_p12, %p276_p11 }
  0x25   :  { %220 = vmatpush3.msra.mxu0 %v50_v5 }
  0x26   :  { %222 = vmatmul.mubr.msk.f32.vlgmr.msra.gmra.mxu0 %vm61_vm1, %v49_v6  ;;  %p279_p0 = pnand %p278_p13, %p272_p10 }
  0xe6   :  { %v131_v8 = vpop.f32.mrf.mxu0 }
  0xe7   :  { %v132_v9 = vadd.f32 %v204_v7, %v131_v8 }
  0xe8   :  { %v223_v10 = vpop.f32.mrf.mxu0 }
  0xe9   :  { %v135_v12 = vmax.f32 %v132_v9, 0.0 }
  0xeb   :  { %v143_v13 = vmul.f32 %v206_v11, %v135_v12 }
  0xed   :  { %144 = vadd.xlane.f32.xlu0 %v143_v13 }
 0x176   :  { %v145_v15 = vpop.xlane.xlu0 %144 }
 0x177   :  { %v153_v16 = vadd.f32 %v207_v14, %v145_v15 }
 0x179   :  { %154 = vxpose.xlu0.b32.start.end [1/1] (short) (narrow) %v153_v16, 8 }
 0x1f5   :  { %v170_v17 = vpop.trf.xlu0 }
 0x1f6   :  { %187 = vst.msk [vmem:[#allocation8] sm:$0x1] %vm186_vm2, %v170_v17 }
 0x1f7   :  { %282 = shalt.err (!%p279_p0)
}
 0x1f8   :  { %197 = dma.vmem_to_hbm [thread:$0]  %s195_s9, 16, %s357_s5, [#allocation5]  }
 0x1f9   :  { %295 = dma.done.wait [#allocation5], 16  }
 0x1fa   :  { %296 = vsyncadd [#allocation5], 4294967280 }
 0x1fb   :  { %201 = vsyncpa [#allocation4], 1 }
 0x1fc   :  { %202 = vsyncpa [#allocation7], 1 }
 0x1fd   :  { %203 = vsyncpa [#allocation5], 1 }

</bundles_post_ra>
